<compile_context>
chip_gen: v6e
topology: v6e:2x2x1
jax: 0.10.0
libtpu: 0.0.40
codegen_flags: <defaults>
</compile_context>

<pallas_src>
import jax
import jax.numpy as jnp
from jax.experimental import pallas as pl
from jax.experimental.pallas import tpu as pltpu


def _round_up(x, m):
    return (x + m - 1) // m * m


def se_head_kernel(x_ref, w1_ref, w2_ref, wc_ref, bc_ref, o_ref):
    """SEBlock (1x1 spatial) + Linear classifier, fused, one batch tile per step.

    x_ref : (TB, C_pad)     backbone feature tile              (bf16)
    w1_ref: (C_pad, H_pad)  SE fc1 weight, pre-transposed      (bf16, no bias)
    w2_ref: (H_pad, C_pad)  SE fc2 weight, pre-transposed      (bf16, no bias)
    wc_ref: (C_pad, NC_pad) classifier weight, pre-transposed  (bf16)
    bc_ref: (1, NC_pad)     classifier bias                    (f32)
    o_ref : (TB, NC_pad)    logits tile                        (bf16 or f32)
    """
    x = x_ref[...]                                                    # bf16

    # SE squeeze: global avg pool over a 1x1 spatial map == identity -> use x.
    h = jnp.dot(x, w1_ref[...], preferred_element_type=jnp.float32)   # (TB, H)
    h = jnp.maximum(h, 0.0)                                           # ReLU (f32)
    s = jnp.dot(h.astype(w2_ref.dtype), w2_ref[...],
                preferred_element_type=jnp.float32)                   # (TB, C)
    s = jax.nn.sigmoid(s)                                             # f32 (EUP)

    # SE excite: channel-wise rescale kept in bf16 (native VALU on v6e/v7x);
    # the product feeds a bf16 MXU operand anyway.
    scaled = x * s.astype(x.dtype)                                    # (TB, C) bf16

    # Classifier (bf16 MXU, f32 accumulate) + bias, stored in o_ref.dtype.
    logits = jnp.dot(scaled, wc_ref[...],
                     preferred_element_type=jnp.float32) + bc_ref[...]
    o_ref[...] = logits.astype(o_ref.dtype)


def _choose_batch_tiling(B, tb_max):
    """Pick (TB, n_tiles, B_pad).

    >= 2 (and an even number of) grid programs so the v7x megacore can split
    the batch across its 2 TensorCores; TB a multiple of 16 (bf16 sublane
    packing) close to ceil(B / n_tiles) so the last tile is not mostly padding.
    """
    assert tb_max % 16 == 0
    n_tiles = max(2, pl.cdiv(B, tb_max))
    if n_tiles % 2:
        n_tiles += 1
    tb = min(tb_max, _round_up(pl.cdiv(B, n_tiles), 16))
    return tb, n_tiles, n_tiles * tb


def prepare_head_params(w1, w2, wc, bc):
    """One-time weight prep (hoisted out of the per-call path).

    Weights come in PyTorch nn.Linear convention (out_features, in_features);
    they are transposed, zero-padded to lane-dense 128-multiples and cast to
    bf16 here so the per-batch call touches only the activations.
    """
    H, C = w1.shape
    NC = wc.shape[0]
    C_pad = _round_up(C, 128)
    H_pad = _round_up(H, 128)
    NC_pad = _round_up(NC, 128)

    w1t = jnp.pad(w1.T, ((0, C_pad - C), (0, H_pad - H))).astype(jnp.bfloat16)
    w2t = jnp.pad(w2.T, ((0, H_pad - H), (0, C_pad - C))).astype(jnp.bfloat16)
    wct = jnp.pad(wc.T, ((0, C_pad - C), (0, NC_pad - NC))).astype(jnp.bfloat16)
    bc2 = jnp.pad(bc.reshape(1, NC), ((0, 0), (0, NC_pad - NC))).astype(jnp.float32)

    return dict(w1t=w1t, w2t=w2t, wct=wct, bc2=bc2,
                C=C, NC=NC, C_pad=C_pad, H_pad=H_pad, NC_pad=NC_pad)


def _build_head_call(TB, n_tiles, B_pad, C_pad, H_pad, NC_pad, out_dtype,
                     single_buffer_weights):
    """Construct the pallas_call for the given static tiling parameters."""
    # Weights never change across grid steps (constant index_map); with
    # Buffered(1) they get a single VMEM buffer instead of a double buffer.
    resident = (dict(pipeline_mode=pl.Buffered(1))
                if single_buffer_weights else {})
    in_specs = [
        pl.BlockSpec((TB, C_pad), lambda i: (i, 0)),                   # x: streamed
        pl.BlockSpec((C_pad, H_pad), lambda i: (0, 0), **resident),    # w1: resident
        pl.BlockSpec((H_pad, C_pad), lambda i: (0, 0), **resident),    # w2: resident
        pl.BlockSpec((C_pad, NC_pad), lambda i: (0, 0), **resident),   # wc: resident
        pl.BlockSpec((1, NC_pad), lambda i: (0, 0), **resident),       # bc: resident
    ]
    return pl.pallas_call(
        se_head_kernel,
        out_shape=jax.ShapeDtypeStruct((B_pad, NC_pad), out_dtype),
        grid_spec=pltpu.PrefetchScalarGridSpec(
            num_scalar_prefetch=0,
            grid=(n_tiles,),
            in_specs=in_specs,
            out_specs=pl.BlockSpec((TB, NC_pad), lambda i: (i, 0)),
        ),
        compiler_params=pltpu.CompilerParams(
            dimension_semantics=("parallel",),   # shard batch tiles across TCs (v7x)
        ),
    )


def swin_with_se_head(feats, params, *, tb_max=1024, out_dtype=jnp.bfloat16):
    """feats: (B, C) backbone features (f32 or bf16); params from
    prepare_head_params. Returns (B, num_classes) logits in out_dtype."""
    B, C = feats.shape
    if C != params["C"]:
        raise ValueError(f"feature dim {C} != prepared {params['C']}")
    C_pad, H_pad, NC_pad = params["C_pad"], params["H_pad"], params["NC_pad"]

    TB, n_tiles, B_pad = _choose_batch_tiling(B, tb_max)

    # Only materialize a padded copy of the activations when actually needed
    # (production C=768 is already a 128-multiple; a bf16 producer skips the
    # cast too). Zero padding is required for correctness (see invariant above).
    x = feats
    if (B_pad, C_pad) != (B, C):
        x = jnp.pad(x, ((0, B_pad - B), (0, C_pad - C)))
    if x.dtype != jnp.bfloat16:
        x = x.astype(jnp.bfloat16)

    args = (x, params["w1t"], params["w2t"], params["wct"], params["bc2"])
    try:
        out = _build_head_call(TB, n_tiles, B_pad, C_pad, H_pad, NC_pad,
                               out_dtype, single_buffer_weights=True)(*args)
    except Exception:
        # pl.Buffered(1) on top-level BlockSpecs not supported on this JAX
        # version; fall back to default (double-buffered) weight blocks.
        out = _build_head_call(TB, n_tiles, B_pad, C_pad, H_pad, NC_pad,
                               out_dtype, single_buffer_weights=False)(*args)

    return out[:B, :params["NC"]]


def reference(feats, w1, w2, wc, bc):
    """Pure-JAX f32 reference of the PyTorch forward (backbone output onward)."""
    y = jnp.maximum(feats @ w1.T, 0.0)
    y = jax.nn.sigmoid(y @ w2.T)
    scaled = feats * y
    return scaled @ wc.T + bc


if __name__ == "__main__":
    # Small shapes consistent with the module structure:
    #   in_features C=64, reduction=16 -> hidden=4, num_classes=8, batch=2.
    B, C, RED, NC = 2, 64, 16, 8
    H = C // RED

    key = jax.random.PRNGKey(0)
    k_feat, k_w1, k_w2, k_wc, k_bc = jax.random.split(key, 5)

    # Deterministic synthetic parameters (PyTorch nn.Linear shape convention).
    feats = jax.random.normal(k_feat, (B, C), dtype=jnp.float32)
    w1 = jax.random.normal(k_w1, (H, C), dtype=jnp.float32) * 0.1   # SE fc1
    w2 = jax.random.normal(k_w2, (C, H), dtype=jnp.float32) * 0.1   # SE fc2
    wc = jax.random.normal(k_wc, (NC, C), dtype=jnp.float32) * 0.1  # classifier
    bc = jax.random.normal(k_bc, (NC,), dtype=jnp.float32) * 0.1

    params = prepare_head_params(w1, w2, wc, bc)   # one-time weight prep
    out = swin_with_se_head(feats, params)         # bf16 logits by default
    out = jax.block_until_ready(out)

    ref = reference(feats, w1, w2, wc, bc)
    assert out.shape == (B, NC)
    # bf16 matmul operands + bf16 logits with f32 accumulation -> relaxed tol.
    assert jnp.allclose(out.astype(jnp.float32), ref, atol=5e-2, rtol=5e-2), \
        "mismatch vs reference"

    print("KERNEL_OK")
</pallas_src>

<mosaic_0001>
module attributes {stable_mosaic.version = 11 : i64} {
  func.func @se_head_kernel(%arg0: i32, %arg1: memref<16x128xbf16, #tpu.memory_space<vmem>>, %arg2: memref<128x128xbf16, #tpu.memory_space<vmem>>, %arg3: memref<128x128xbf16, #tpu.memory_space<vmem>>, %arg4: memref<128x128xbf16, #tpu.memory_space<vmem>>, %arg5: memref<1x128xf32, #tpu.memory_space<vmem>>, %arg6: memref<16x128xbf16, #tpu.memory_space<vmem>>) attributes {dimension_semantics = [#tpu.dimension_semantics<parallel>], iteration_bounds = array<i64: 2>, scalar_prefetch = 0 : i64, scratch_operands = 0 : i64, tpu.core_type = #tpu.core_type<tc>, window_params = [{transform_indices = @transform_0, window_bounds = array<i64: 16, 128>}, {pipeline_mode = #tpu.pipeline_mode<synchronous>, transform_indices = @transform_1, window_bounds = array<i64: 128, 128>}, {pipeline_mode = #tpu.pipeline_mode<synchronous>, transform_indices = @transform_2, window_bounds = array<i64: 128, 128>}, {pipeline_mode = #tpu.pipeline_mode<synchronous>, transform_indices = @transform_3, window_bounds = array<i64: 128, 128>}, {pipeline_mode = #tpu.pipeline_mode<synchronous>, transform_indices = @transform_4, window_bounds = array<i64: 1, 128>}, {transform_indices = @transform_5, window_bounds = array<i64: 16, 128>}]} {
    %c0 = arith.constant 0 : index
    %c0_0 = arith.constant 0 : index
    %0 = vector.load %arg1[%c0, %c0_0] : memref<16x128xbf16, #tpu.memory_space<vmem>>, vector<16x128xbf16>
    %c0_1 = arith.constant 0 : index
    %c0_2 = arith.constant 0 : index
    %1 = vector.load %arg2[%c0_1, %c0_2] : memref<128x128xbf16, #tpu.memory_space<vmem>>, vector<128x128xbf16>
    %cst = arith.constant dense<0.000000e+00> : vector<16x128xf32>
    %2 = tpu.matmul %0, %1, %cst {dimension_numbers = #tpu.dot_dimension_numbers<[1], [0], [0], [1], [0, 0, 1, 1], [], []>} : vector<16x128xbf16>, vector<128x128xbf16>, vector<16x128xf32> -> vector<16x128xf32>
    %cst_3 = arith.constant 0.000000e+00 : f32
    %3 = vector.broadcast %cst_3 : f32 to vector<16x128xf32>
    %4 = arith.maximumf %2, %3 : vector<16x128xf32>
    %5 = arith.truncf %4 : vector<16x128xf32> to vector<16x128xbf16>
    %c0_4 = arith.constant 0 : index
    %c0_5 = arith.constant 0 : index
    %6 = vector.load %arg3[%c0_4, %c0_5] : memref<128x128xbf16, #tpu.memory_space<vmem>>, vector<128x128xbf16>
    %cst_6 = arith.constant dense<0.000000e+00> : vector<16x128xf32>
    %7 = tpu.matmul %5, %6, %cst_6 {dimension_numbers = #tpu.dot_dimension_numbers<[1], [0], [0], [1], [0, 0, 1, 1], [], []>} : vector<16x128xbf16>, vector<128x128xbf16>, vector<16x128xf32> -> vector<16x128xf32>
    %8 = arith.negf %7 : vector<16x128xf32>
    %9 = math.exp %8 : vector<16x128xf32>
    %cst_7 = arith.constant 1.000000e+00 : f32
    %10 = vector.broadcast %cst_7 : f32 to vector<16x128xf32>
    %11 = arith.addf %10, %9 : vector<16x128xf32>
    %12 = arith.divf %10, %11 : vector<16x128xf32>
    %13 = arith.truncf %12 : vector<16x128xf32> to vector<16x128xbf16>
    %14 = arith.mulf %0, %13 : vector<16x128xbf16>
    %c0_8 = arith.constant 0 : index
    %c0_9 = arith.constant 0 : index
    %15 = vector.load %arg4[%c0_8, %c0_9] : memref<128x128xbf16, #tpu.memory_space<vmem>>, vector<128x128xbf16>
    %cst_10 = arith.constant dense<0.000000e+00> : vector<16x128xf32>
    %16 = tpu.matmul %14, %15, %cst_10 {dimension_numbers = #tpu.dot_dimension_numbers<[1], [0], [0], [1], [0, 0, 1, 1], [], []>} : vector<16x128xbf16>, vector<128x128xbf16>, vector<16x128xf32> -> vector<16x128xf32>
    %c0_11 = arith.constant 0 : index
    %c0_12 = arith.constant 0 : index
    %17 = vector.load %arg5[%c0_11, %c0_12] : memref<1x128xf32, #tpu.memory_space<vmem>>, vector<1x128xf32>
    %18 = vector.broadcast %17 : vector<1x128xf32> to vector<16x128xf32>
    %19 = arith.addf %16, %18 : vector<16x128xf32>
    %20 = arith.truncf %19 : vector<16x128xf32> to vector<16x128xbf16>
    %c0_13 = arith.constant 0 : index
    %c0_14 = arith.constant 0 : index
    %21 = vector.load %arg6[%c0_13, %c0_14] : memref<16x128xbf16, #tpu.memory_space<vmem>>, vector<16x128xbf16>
    tpu.vector_store %arg6[%c0_13, %c0_14], %20 {strides = array<i32>} : memref<16x128xbf16, #tpu.memory_space<vmem>>, vector<16x128xbf16>,
    return
  }
  func.func @transform_0(%arg0: i32) -> (i32, i32) {
    %c0_i32 = arith.constant 0 : i32
    %c0_i32_0 = arith.constant 0 : i32
    return %arg0, %c0_i32 : i32, i32
  }
  func.func @transform_1(%arg0: i32) -> (i32, i32) {
    %c0_i32 = arith.constant 0 : i32
    %c0_i32_0 = arith.constant 0 : i32
    %c0_i32_1 = arith.constant 0 : i32
    return %c0_i32, %c0_i32_0 : i32, i32
  }
  func.func @transform_2(%arg0: i32) -> (i32, i32) {
    %c0_i32 = arith.constant 0 : i32
    %c0_i32_0 = arith.constant 0 : i32
    %c0_i32_1 = arith.constant 0 : i32
    return %c0_i32, %c0_i32_0 : i32, i32
  }
  func.func @transform_3(%arg0: i32) -> (i32, i32) {
    %c0_i32 = arith.constant 0 : i32
    %c0_i32_0 = arith.constant 0 : i32
    %c0_i32_1 = arith.constant 0 : i32
    return %c0_i32, %c0_i32_0 : i32, i32
  }
  func.func @transform_4(%arg0: i32) -> (i32, i32) {
    %c0_i32 = arith.constant 0 : i32
    %c0_i32_0 = arith.constant 0 : i32
    %c0_i32_1 = arith.constant 0 : i32
    return %c0_i32, %c0_i32_0 : i32, i32
  }
  func.func @transform_5(%arg0: i32) -> (i32, i32) {
    %c0_i32 = arith.constant 0 : i32
    %c0_i32_0 = arith.constant 0 : i32
    return %arg0, %c0_i32 : i32, i32
  }
}

module attributes {stable_mosaic.version = 11 : i64} {
  func.func @se_head_kernel(%arg0: i32, %arg1: memref<16x128xbf16, #tpu.memory_space<vmem>>, %arg2: memref<128x128xbf16, #tpu.memory_space<vmem>>, %arg3: memref<128x128xbf16, #tpu.memory_space<vmem>>, %arg4: memref<128x128xbf16, #tpu.memory_space<vmem>>, %arg5: memref<1x128xf32, #tpu.memory_space<vmem>>, %arg6: memref<16x128xbf16, #tpu.memory_space<vmem>>) attributes {dimension_semantics = [#tpu.dimension_semantics<parallel>], iteration_bounds = array<i64: 2>, scalar_prefetch = 0 : i64, scratch_operands = 0 : i64, tpu.core_type = #tpu.core_type<tc>, window_params = [{transform_indices = @transform_0, window_bounds = array<i64: 16, 128>}, {pipeline_mode = #tpu.pipeline_mode<synchronous>, transform_indices = @transform_1, window_bounds = array<i64: 128, 128>}, {pipeline_mode = #tpu.pipeline_mode<synchronous>, transform_indices = @transform_2, window_bounds = array<i64: 128, 128>}, {pipeline_mode = #tpu.pipeline_mode<synchronous>, transform_indices = @transform_3, window_bounds = array<i64: 128, 128>}, {pipeline_mode = #tpu.pipeline_mode<synchronous>, transform_indices = @transform_4, window_bounds = array<i64: 1, 128>}, {transform_indices = @transform_5, window_bounds = array<i64: 16, 128>}]} {
    %c0 = arith.constant 0 : index
    %c0_0 = arith.constant 0 : index
    %0 = vector.load %arg1[%c0, %c0_0] : memref<16x128xbf16, #tpu.memory_space<vmem>>, vector<16x128xbf16>
    %c0_1 = arith.constant 0 : index
    %c0_2 = arith.constant 0 : index
    %1 = vector.load %arg2[%c0_1, %c0_2] : memref<128x128xbf16, #tpu.memory_space<vmem>>, vector<128x128xbf16>
    %cst = arith.constant dense<0.000000e+00> : vector<16x128xf32>
    %2 = tpu.matmul %0, %1, %cst {dimension_numbers = #tpu.dot_dimension_numbers<[1], [0], [0], [1], [0, 0, 1, 1], [], []>} : vector<16x128xbf16>, vector<128x128xbf16>, vector<16x128xf32> -> vector<16x128xf32>
    %cst_3 = arith.constant 0.000000e+00 : f32
    %3 = vector.broadcast %cst_3 : f32 to vector<16x128xf32>
    %4 = arith.maximumf %2, %3 : vector<16x128xf32>
    %5 = arith.truncf %4 : vector<16x128xf32> to vector<16x128xbf16>
    %c0_4 = arith.constant 0 : index
    %c0_5 = arith.constant 0 : index
    %6 = vector.load %arg3[%c0_4, %c0_5] : memref<128x128xbf16, #tpu.memory_space<vmem>>, vector<128x128xbf16>
    %cst_6 = arith.constant dense<0.000000e+00> : vector<16x128xf32>
    %7 = tpu.matmul %5, %6, %cst_6 {dimension_numbers = #tpu.dot_dimension_numbers<[1], [0], [0], [1], [0, 0, 1, 1], [], []>} : vector<16x128xbf16>, vector<128x128xbf16>, vector<16x128xf32> -> vector<16x128xf32>
    %8 = arith.negf %7 : vector<16x128xf32>
    %9 = math.exp %8 : vector<16x128xf32>
    %cst_7 = arith.constant 1.000000e+00 : f32
    %10 = vector.broadcast %cst_7 : f32 to vector<16x128xf32>
    %11 = arith.addf %10, %9 : vector<16x128xf32>
    %12 = arith.divf %10, %11 : vector<16x128xf32>
    %13 = arith.truncf %12 : vector<16x128xf32> to vector<16x128xbf16>
    %14 = arith.mulf %0, %13 : vector<16x128xbf16>
    %c0_8 = arith.constant 0 : index
    %c0_9 = arith.constant 0 : index
    %15 = vector.load %arg4[%c0_8, %c0_9] : memref<128x128xbf16, #tpu.memory_space<vmem>>, vector<128x128xbf16>
    %cst_10 = arith.constant dense<0.000000e+00> : vector<16x128xf32>
    %16 = tpu.matmul %14, %15, %cst_10 {dimension_numbers = #tpu.dot_dimension_numbers<[1], [0], [0], [1], [0, 0, 1, 1], [], []>} : vector<16x128xbf16>, vector<128x128xbf16>, vector<16x128xf32> -> vector<16x128xf32>
    %c0_11 = arith.constant 0 : index
    %c0_12 = arith.constant 0 : index
    %17 = vector.load %arg5[%c0_11, %c0_12] : memref<1x128xf32, #tpu.memory_space<vmem>>, vector<1x128xf32>
    %18 = vector.broadcast %17 : vector<1x128xf32> to vector<16x128xf32>
    %19 = arith.addf %16, %18 : vector<16x128xf32>
    %20 = arith.truncf %19 : vector<16x128xf32> to vector<16x128xbf16>
    %c0_13 = arith.constant 0 : index
    %c0_14 = arith.constant 0 : index
    %21 = vector.load %arg6[%c0_13, %c0_14] : memref<16x128xbf16, #tpu.memory_space<vmem>>, vector<16x128xbf16>
    tpu.vector_store %arg6[%c0_13, %c0_14], %20 {strides = array<i32>} : memref<16x128xbf16, #tpu.memory_space<vmem>>, vector<16x128xbf16>,
    return
  }
  func.func @transform_0(%arg0: i32) -> (i32, i32) {
    %c0_i32 = arith.constant 0 : i32
    %c0_i32_0 = arith.constant 0 : i32
    return %arg0, %c0_i32 : i32, i32
  }
  func.func @transform_1(%arg0: i32) -> (i32, i32) {
    %c0_i32 = arith.constant 0 : i32
    %c0_i32_0 = arith.constant 0 : i32
    %c0_i32_1 = arith.constant 0 : i32
    return %c0_i32, %c0_i32_0 : i32, i32
  }
  func.func @transform_2(%arg0: i32) -> (i32, i32) {
    %c0_i32 = arith.constant 0 : i32
    %c0_i32_0 = arith.constant 0 : i32
    %c0_i32_1 = arith.constant 0 : i32
    return %c0_i32, %c0_i32_0 : i32, i32
  }
  func.func @transform_3(%arg0: i32) -> (i32, i32) {
    %c0_i32 = arith.constant 0 : i32
    %c0_i32_0 = arith.constant 0 : i32
    %c0_i32_1 = arith.constant 0 : i32
    return %c0_i32, %c0_i32_0 : i32, i32
  }
  func.func @transform_4(%arg0: i32) -> (i32, i32) {
    %c0_i32 = arith.constant 0 : i32
    %c0_i32_0 = arith.constant 0 : i32
    %c0_i32_1 = arith.constant 0 : i32
    return %c0_i32, %c0_i32_0 : i32, i32
  }
  func.func @transform_5(%arg0: i32) -> (i32, i32) {
    %c0_i32 = arith.constant 0 : i32
    %c0_i32_0 = arith.constant 0 : i32
    return %arg0, %c0_i32 : i32, i32
  }
}

</mosaic_0001>

<bundles_post_ra>
// kernel: tpu_custom_call.1
= control target key start
LH: loop header
LB: loop body
LE: loop exit
PB: predicated region body
PF: predicated region fallthrough
CT: control target
= control target key end

     0   :  { %10 = vsyncpa [#allocation3], 0  ;;  %s1526_s0 = inlined_call_operand.hbm [shape: bf16[32,128], index: 0, kind: input, shape index: {}]   ;;  %s1527_s1 = inlined_call_operand.hbm [shape: bf16[128,128], index: 1, kind: input, shape index: {}]   ;;  %s1528_s2 = inlined_call_operand.hbm [shape: bf16[128,128], index: 2, kind: input, shape index: {}]   ;;  %s1529_s3 = inlined_call_operand.hbm [shape: bf16[128,128], index: 3, kind: input, shape index: {}]   ;;  %s1530_s4 = inlined_call_operand.vmem [shape: f32[1,128], index: 4, kind: input, shape index: {}]   ;;  %s1531_s5 = inlined_call_operand.hbm [shape: bf16[32,128], index: 5, kind: output, shape index: {}]  }
   0x1   :  { %12 = vsyncpa [#allocation3 + $0x1], 0 }
   0x2   :  { %13 = vsyncpa [#allocation6], 0 }
   0x3   :  { %14 = vsyncpa [#allocation9], 0 }
   0x4   :  { %15 = vsyncpa [#allocation4], 0 }
   0x5   :  { %17 = vsyncpa [#allocation4 + $0x1], 0  ;;  %s1265_s18 = smov 0   ;;  %s1267_s19 = smov 0  }
   0x6   :  { %s1269_s20 = smov 0   ;;  %s1271_s21 = smov 0  }
   0x7 LB: > { %s1286_s22 = sadd.s32 4294967295, %s1222_s21   ;;  %s777_s23 = sadd.s32 4294967294, %s1222_s21   ;;  %s1222_s21 = sphi %s1271_s21, %s1556_s21   ;;  %s1218_s20 = sphi %s1269_s20, %s1555_s20   ;;  %s1214_s19 = sphi %s1267_s19, %s1554_s19   ;;  %s1210_s18 = sphi %s1265_s18, %s1553_s18  }
   0x8   : > { %p43_p0 = scmp.ne.s32.totalorder %s1214_s19, %s1210_s18  ;;  %p1532_p1 = scmp.eq.s32.totalorder %s1286_s22, 0 }
   0x9   : > { %p151_p2 = scmp.eq.s32.totalorder %s1286_s22, 1  ;;  %p157_p3 = scmp.eq.s32.totalorder %s777_s23, 1 }
   0xa   : > { %p1295_p4 = por %p1532_p1, %p43_p0  ;;  %p778_p5 = scmp.ge.s32.totalorder %s1222_s21, 1 }
   0xb   : > { %p1300_p6 = por %p157_p3, %p43_p0  ;;  %p164_p7 = scmp.lt.s32.totalorder %s1222_s21, 3 }
   0xc   : > { %s1537_s24 = scalar_select %p1295_p4, 1, 0 }
   0xd   : > { %s1538_s25 = scalar_select %p1300_p6, 1, 0 }
   0xe   : > { %p1305_p8 = pnand %p778_p5, %p164_p7  ;;  %s1224_s27 = smov [#allocation5]  }
   0xf   : > { %s176_s28 = sshll.u32 %s1224_s27, 4  ;;  %s1225_s30 = smov [#allocation7]   ;;  %s177_s28 = int_to_ptr.vmem [resolvable:$true] %s176_s28 }
  0x10   : > { %s1539_s26 = scalar_select %p1305_p8, 1, 0 }
  0x11   : > { %p944_p9 = pneg %p1305_p8  ;;  %s189_s6 = sshll.u32 %s1225_s30, 4  ;;  %s190_s6 = int_to_ptr.vmem [resolvable:$true] %s189_s6 }
  0x12   : > { %s1226_s7 = smov [#allocation8]   ;;  %s1055_s9 = scalar_lea.vmem %s177_s28, 1024 }
  0x13   : > { %p1314_p11 = pnand %p944_p9, %p1532_p1  ;;  %s202_s8 = sshll.u32 %s1226_s7, 4  ;;  %s203_s8 = int_to_ptr.vmem [resolvable:$true] %s202_s8 }
  0x14   : > { %p1056_p13 = scmp.ne.s32.totalorder %s177_s28, %s1055_s9  ;;  %p1063_p5 = scmp.lt.s32.totalorder %s177_s28, %s177_s28 }
  0x15   : > { %p1046_p12 = pneg %p1314_p11  ;;  %p1064_p7 = scmp.lt.s32.totalorder %s1055_s9, %s1055_s9 }
  0x17   : > { %p1058_p0 = pnand %p1056_p13, %p1046_p12  ;;  %p1065_p9 = por %p1064_p7, %p1063_p5 }
  0x19   : > { %p1059_p3 = pneg %p1058_p0 }
  0x1b   : > { %p1066_p10 = pnand %p1065_p9, %p1059_p3 }
  0x1d   : > { %1069 = shalt.err (!%p1066_p10)
}
  0x1e   : > { %s1533_s10 = smov 64   ;;  %s1228_s11 = smov 4  }
  0x1f   : > { %947 = dma.hbm_to_vmem [thread:$0]  (!%p1314_p11), %s1527_s1, 1024, %s177_s28, [#allocation6], %s1533_s10, %s1533_s10, %s1228_s11  }
  0x20   : > { %s1081_s14 = scalar_lea.vmem %s190_s6, 1024  ;;  %p1089_p3 = scmp.lt.s32.totalorder %s190_s6, %s190_s6 }
  0x21   : > { %p1082_p13 = scmp.ne.s32.totalorder %s190_s6, %s1081_s14  ;;  %p1090_p10 = scmp.lt.s32.totalorder %s1081_s14, %s1081_s14 }
  0x23   : > { %p1084_p0 = pnand %p1082_p13, %p1046_p12  ;;  %p1091_p7 = por %p1090_p10, %p1089_p3 }
  0x25   : > { %p1085_p5 = pneg %p1084_p0 }
  0x27   : > { %p1092_p9 = pnand %p1091_p7, %p1085_p5 }
  0x29   : > { %1095 = shalt.err (!%p1092_p9)
}
  0x2a   : > { %950 = dma.hbm_to_vmem [thread:$0]  (!%p1314_p11), %s1528_s2, 1024, %s190_s6, [#allocation6], %s1533_s10, %s1533_s10, %s1228_s11  }
  0x2b   : > { %s1107_s17 = scalar_lea.vmem %s203_s8, 1024  ;;  %p1115_p3 = scmp.lt.s32.totalorder %s203_s8, %s203_s8 }
  0x2c   : > { %p1108_p1 = scmp.ne.s32.totalorder %s203_s8, %s1107_s17  ;;  %p1116_p5 = scmp.lt.s32.totalorder %s1107_s17, %s1107_s17 }
  0x2e   : > { %p1110_p13 = pnand %p1108_p1, %p1046_p12  ;;  %p1117_p10 = por %p1116_p5, %p1115_p3 }
  0x30   : > { %p1111_p0 = pneg %p1110_p13 }
  0x32   : > { %p1118_p7 = pnand %p1117_p10, %p1111_p0 }
  0x34   : > { %1121 = shalt.err (!%p1118_p7)
}
  0x35   : > { %953 = dma.hbm_to_vmem [thread:$0]  (!%p1314_p11), %s1529_s3, 1024, %s203_s8, [#allocation9], %s1533_s10, %s1533_s10, %s1228_s11  }
  0x36   : > { %s1354_s28 = sadd.s32 1, %s1222_s21   ;;  %s30_s30 = sadd.s32 1, %s1218_s20 }
  0x37   : > { %s27_s29 = ssub.s32 %s1222_s21, %s1354_s28  ;;  %p37_p12 = scmp.ne.s32.totalorder %s1218_s20, %s1214_s19 }
  0x38   : > { %p28_p1 = scmp.eq.s32.totalorder %s27_s29, 0  ;;  %p38_p9 = scmp.eq.s32.totalorder %s1222_s21, 0 }
  0x39   : > { %p965_p13 = scmp.lt.s32.totalorder %s1222_s21, 2  ;;  %p1368_p3 = por %p151_p2, %p37_p12 }
  0x3a   : > { %s1364_s6 = scalar_select %p28_p1, %s1218_s20, %s30_s30  }
  0x3b   : > { %p39_p0 = por %p38_p9, %p37_p12  ;;  %s219_s9 = sand.u32 1, %s1218_s20  }
  0x3c   : > { %s1541_s7 = scalar_select %p1368_p3, 1, 0 }
  0x3d   : > { %s830_s12 = sshll.u32 %s1222_s21, 7  ;;  %s783_s8 = sshll.u32 %s219_s9, 3 }
  0x3e   : > { %s1377_s15 = scalar_lea.hbm %s1526_s0, %s830_s12  ;;  %s223_s16 = scalar_lea.vmem [#allocation2], %s783_s8 }
  0x3f   : > { %s230_s17 = sshll.u32 %s223_s16, 4  ;;  %p1379_p11 = pnand %p965_p13, %p39_p0  ;;  %s1383_s17 = int_to_ptr.vmem [resolvable:$true] %s230_s17 }
  0x40   : > { %s1385_s27 = scalar_lea.sflag [#allocation3], %s219_s9  ;;  %s1122_s29 = scalar_lea.hbm %s1377_s15, 128 }
  0x41   : > { %p1123_p2 = scmp.ne.s32.totalorder %s1377_s15, %s1122_s29  ;;  %p1124_p5 = pneg %p1379_p11 }
  0x42   : > { %s1127_s8 = scalar_lea.hbm %s1526_s0, 256  ;;  %p1128_p1 = scmp.lt.s32.totalorder %s1377_s15, %s1526_s0 }
  0x43   : > { %p1125_p10 = pnand %p1124_p5, %p1123_p2  ;;  %p1129_p12 = scmp.lt.s32.totalorder %s1127_s8, %s1122_s29 }
  0x45   : > { %p1126_p7 = pneg %p1125_p10  ;;  %p1130_p9 = por %p1129_p12, %p1128_p1 }
  0x47   : > { %p1131_p13 = pnand %p1130_p9, %p1126_p7 }
  0x49   : > { %1134 = shalt.err (!%p1131_p13)
}
  0x4a   : > { %s1135_s9 = scalar_lea.vmem %s1383_s17, 128  ;;  %s1229_s16 = smov [#allocation2]  }
  0x4b   : > { %p1136_p0 = scmp.ne.s32.totalorder %s1383_s17, %s1135_s9  ;;  %s1140_s10 = sshll.u32 %s1229_s16, 4  ;;  %s1141_s10 = int_to_ptr.vmem [resolvable:$false] %s1140_s10 }
  0x4c   : > { %s1142_s30 = scalar_lea.vmem %s1141_s10, 256  ;;  %p1143_p10 = scmp.lt.s32.totalorder %s1383_s17, %s1141_s10 }
  0x4d   : > { %p1138_p6 = pnand %p1136_p0, %p1124_p5  ;;  %p1144_p3 = scmp.lt.s32.totalorder %s1142_s30, %s1135_s9 }
  0x4f   : > { %p1139_p2 = pneg %p1138_p6  ;;  %p1145_p4 = por %p1144_p3, %p1143_p10 }
  0x51   : > { %p1146_p8 = pnand %p1145_p4, %p1139_p2 }
  0x53   : > { %1149 = shalt.err (!%p1146_p8)
}
  0x54   : > { %s1543_s29 = smov 64   ;;  %p1544_p6 = scmp.ne.s32.totalorder %s1539_s26, 0 }
  0x55   : > { %957 = dma.hbm_to_vmem [thread:$0]  (!%p1379_p11), %s1377_s15, 128, %s1383_s17, %s1385_s27, %s1543_s29, %s1543_s29, %s1228_s11  }
  0x56   : > { %242 = sbr.rel (%p1544_p6) target bundleno = 784 (0x310), region = 40  ;;  %s1412_s12 = sand.u32 (!%p1544_p6), 1, %s1214_s19  }
  0x57   : > { %s787_s10 = sshll.u32 (!%p1544_p6), %s1412_s12, 3  ;;  %s245_s8 = scalar_lea.sflag (!%p1544_p6), [#allocation3], %s1412_s12 }
  0x58   : > { %s1418_s23 = scalar_lea.vmem (!%p1544_p6), [#allocation2], %s787_s10  ;;  %p1545_p4 = scmp.ne.s32.totalorder (!%p1544_p6), %s1537_s24, 0 }
  0x5b   : > { %1193 = dma.done.wait (%p1545_p4), %s245_s8, 128  }
  0x5c   : > { %1195 = vsyncadd (%p1545_p4), %s245_s8, 4294967168  ;;  %p1546_p8 = scmp.eq.s32.totalorder %s1286_s22, 0 }
  0x5e   : > { %1197 = dma.done.wait (%p1546_p8), [#allocation6], 2048   ;;  %p1547_p3 = pmov %p1546_p8 }
  0x60   : > { %1199 = vsyncadd (%p1547_p3), [#allocation6], 4294965248  ;;  %p1548_p11 = pmov %p1547_p3 }
  0x61   : > { %p1549_p5 = pmov %p1547_p3 }
  0x62   : > { %1201 = dma.done.wait (%p1548_p11), [#allocation9], 1024  }
  0x63   : > { %1203 = vsyncadd (%p1549_p5), [#allocation9], 4294966272  ;;  %v1230_v0 = vmov 0.0   ;;  %vm1231_vm0 = vmmov 0   ;;  %v1011_v1 = vld [vmem:[#allocation5 + $0x38] sm:$0xff]   ;;  %v1012_v2 = vld [vmem:[#allocation5 + $0x30] sm:$0xff]  }
  0x64   : > { %868 = vmatprep.subr.bf16.mxu0 %v1230_v0  ;;  %884 = vmatprep.mubr.msk.bf16.mxu0 %vm1231_vm0, %v1230_v0  ;;  %v1013_v3 = vld [vmem:[#allocation5 + $0x28] sm:$0xff]   ;;  %v1020_v4 = vld [vmem:[#allocation7 + $0x38] sm:$0xff]   ;;  %v1014_v5 = vld [vmem:[#allocation5 + $0x20] sm:$0xff]   ;;  %s286_s11 = scalar_lea.vmem [#allocation10], %s787_s10  ;;  %s835_s17 = sshll.u32 %s1286_s22, 7 }
  0x65   : > { %888 = vmatprep.subr.bf16.mxu1 %v1230_v0  ;;  %904 = vmatprep.mubr.msk.bf16.mxu1 %vm1231_vm0, %v1230_v0  ;;  %v1021_v6 = vld [vmem:[#allocation7 + $0x30] sm:$0xff]   ;;  %v1015_v7 = vld [vmem:[#allocation5 + $0x18] sm:$0xff]   ;;  %v1022_v8 = vld [vmem:[#allocation7 + $0x28] sm:$0xff]   ;;  %s675_s15 = sshll.u32 %s286_s11, 4  ;;  %s1483_s14 = scalar_lea.hbm %s1531_s5, %s835_s17  ;;  %s1478_s15 = int_to_ptr.vmem [resolvable:$true] %s675_s15 }
  0x66   : > { %869 = vmatpush3.bf16.msra.mxu0 %v1011_v1  ;;  %889 = vmatpush3.bf16.msra.mxu1 %v1020_v4  ;;  %v1016_v9 = vld [vmem:[#allocation5 + $0x10] sm:$0xff]   ;;  %v1023_v10 = vld [vmem:[#allocation7 + $0x20] sm:$0xff]   ;;  %v1017_v11 = vld [vmem:[#allocation5 + $0x8] sm:$0xff]   ;;  %s662_s9 = scalar_lea.sflag [#allocation4], %s1412_s12  ;;  %s1150_s16 = scalar_lea.vmem %s1478_s15, 128 }
  0x67   : > { %870 = vmatprep.subr.bf16.mxu0 %v1230_v0  ;;  %890 = vmatprep.subr.bf16.mxu1 %v1230_v0  ;;  %v1024_v12 = vld [vmem:[#allocation7 + $0x18] sm:$0xff]   ;;  %v1018_v13 = vld [vmem:[#allocation5] sm:$0xff]   ;;  %v1025_v16 = vld [vmem:[#allocation7 + $0x10] sm:$0xff]   ;;  %p1151_p7 = scmp.ne.s32.totalorder %s1478_s15, %s1150_s16  ;;  %p1550_p1 = scmp.ne.s32.totalorder %s1541_s7, 0 }
  0x68   : > { %v1449_v14 = vld [vmem:[%s1418_s23] sm:$0xf]  ;;  %v1452_v15 = vld [vmem:[%s1418_s23 + $0x4] sm:$0xf]  ;;  %v1026_v18 = vld [vmem:[#allocation7 + $0x8] sm:$0xff]   ;;  %s1232_s22 = smov [#allocation10]  }
  0x69   : > { %v792_v17 = vcombine.low %v1449_v14, %v1452_v15  ;;  %v1027_v19 = vld [vmem:[#allocation7] sm:$0xff]   ;;  %v1028_v27 = vld [vmem:[#allocation8 + $0x38] sm:$0xff]   ;;  %v1029_v28 = vld [vmem:[#allocation8 + $0x30] sm:$0xff]   ;;  %p1152_p12 = pnand %p1151_p7, %p1550_p1  ;;  %s1154_s30 = sshll.u32 %s1232_s22, 4  ;;  %s1155_s30 = int_to_ptr.vmem [resolvable:$false] %s1154_s30 }
  0x6a   : > { %871 = vmatpush3.bf16.msra.mxu0 %v1012_v2  ;;  %891 = vmatpush3.bf16.msra.mxu1 %v1021_v6  ;;  %v1030_v29 = vld [vmem:[#allocation8 + $0x28] sm:$0xff]   ;;  %v1031_v30 = vld [vmem:[#allocation8 + $0x20] sm:$0xff]   ;;  %v1032_v31 = vld [vmem:[#allocation8 + $0x18] sm:$0xff]   ;;  %s1156_s29 = scalar_lea.vmem %s1155_s30, 256  ;;  %p1157_p13 = scmp.lt.s32.totalorder %s1478_s15, %s1155_s30 }
  0x6b   : > { %872 = vmatprep.subr.bf16.mxu0 %v1230_v0  ;;  %892 = vmatprep.subr.bf16.mxu1 %v1230_v0  ;;  %v1033_v32 = vld [vmem:[#allocation8 + $0x10] sm:$0xff]   ;;  %v1034_v33 = vld [vmem:[#allocation8 + $0x8] sm:$0xff]   ;;  %v1035_v34 = vld [vmem:[#allocation8] sm:$0xff]   ;;  %p1153_p9 = pneg %p1152_p12  ;;  %p1158_p0 = scmp.lt.s32.totalorder %s1156_s29, %s1150_s16 }
  0x6c   : > { %v813_v53 = vld [vmem:[%s1530_s4] ss:$0 sm:$0xff] }
  0x6d   : > { %p1159_p2 = por %p1158_p0, %p1157_p13 }
  0x6e   : > { %873 = vmatpush3.bf16.msra.mxu0 %v1013_v3  ;;  %893 = vmatpush3.bf16.msra.mxu1 %v1022_v8 }
  0x6f   : > { %874 = vmatprep.subr.bf16.mxu0 %v1230_v0  ;;  %894 = vmatprep.subr.bf16.mxu1 %v1230_v0  ;;  %p1160_p10 = pnand %p1159_p2, %p1153_p9 }
  0x72   : > { %875 = vmatpush3.bf16.msra.mxu0 %v1014_v5  ;;  %895 = vmatpush3.bf16.msra.mxu1 %v1023_v10 }
  0x73   : > { %876 = vmatprep.subr.bf16.mxu0 %v1230_v0  ;;  %896 = vmatprep.subr.bf16.mxu1 %v1230_v0 }
  0x76   : > { %877 = vmatpush3.bf16.msra.mxu0 %v1015_v7  ;;  %897 = vmatpush3.bf16.msra.mxu1 %v1024_v12 }
  0x77   : > { %878 = vmatprep.subr.bf16.mxu0 %v1230_v0  ;;  %898 = vmatprep.subr.bf16.mxu1 %v1230_v0 }
  0x7a   : > { %879 = vmatpush3.bf16.msra.mxu0 %v1016_v9  ;;  %899 = vmatpush3.bf16.msra.mxu1 %v1025_v16 }
  0x7b   : > { %880 = vmatprep.subr.bf16.mxu0 %v1230_v0  ;;  %900 = vmatprep.subr.bf16.mxu1 %v1230_v0 }
  0x7e   : > { %881 = vmatpush3.bf16.msra.mxu0 %v1017_v11  ;;  %901 = vmatpush3.bf16.msra.mxu1 %v1026_v18 }
  0x7f   : > { %882 = vmatprep.subr.bf16.mxu0 %v1230_v0  ;;  %902 = vmatprep.subr.bf16.mxu1 %v1230_v0 }
  0x82   : > { %883 = vmatpush3.bf16.msra.mxu0 %v1018_v13  ;;  %903 = vmatpush3.bf16.msra.mxu1 %v1027_v19 }
  0x83   : > { %908 = vmatprep.subr.bf16.mxu0 %v1230_v0 }
  0x85   : > { %885 = vmatmul.mubr.bf16.vlgmr.msra.gmra.mxu0 %v792_v17 }
  0x86   : > { %924 = vmatprep.mubr.msk.bf16.mxu0 %vm1231_vm0, %v1230_v0  ;;  %909 = vmatpush3.bf16.msra.mxu0 %v1028_v27 }
  0x87   : > { %910 = vmatprep.subr.bf16.mxu0 %v1230_v0 }
  0x8a   : > { %911 = vmatpush3.bf16.msra.mxu0 %v1029_v28 }
  0x8b   : > { %912 = vmatprep.subr.bf16.mxu0 %v1230_v0 }
  0x8e   : > { %913 = vmatpush3.bf16.msra.mxu0 %v1030_v29 }
  0x8f   : > { %914 = vmatprep.subr.bf16.mxu0 %v1230_v0 }
  0x92   : > { %915 = vmatpush3.bf16.msra.mxu0 %v1031_v30 }
  0x93   : > { %916 = vmatprep.subr.bf16.mxu0 %v1230_v0 }
  0x96   : > { %917 = vmatpush3.bf16.msra.mxu0 %v1032_v31 }
  0x97   : > { %918 = vmatprep.subr.bf16.mxu0 %v1230_v0 }
  0x9a   : > { %919 = vmatpush3.bf16.msra.mxu0 %v1033_v32 }
  0x9b   : > { %920 = vmatprep.subr.bf16.mxu0 %v1230_v0 }
  0x9e   : > { %921 = vmatpush3.bf16.msra.mxu0 %v1034_v33 }
  0x9f   : > { %922 = vmatprep.subr.bf16.mxu0 %v1230_v0 }
  0xa2   : > { %923 = vmatpush3.bf16.msra.mxu0 %v1035_v34 }
 0x145   : > { %v396_v20 = vpop.f32.mrf.mxu0 }
 0x146   : > { %v403_v23 = vmax.f32 %v396_v20, 0.0 }
 0x147   : > { %v886_v21 = vpop.f32.mrf.mxu0 }
 0x149   : > { %v399_v22 = vpop.f32.mrf.mxu0 }
 0x14a   : > { %v404_v24 = vmax.f32 %v399_v22, 0.0 }
 0x14b   : > { %v887_v25 = vpop.f32.mrf.mxu0 }
 0x14c   : > { %v405_v26 = vpack.c.bf16 %v404_v24, %v403_v23 }
 0x14e   : > { %905 = vmatmul.mubr.bf16.vlgmr.msra.gmra.mxu1 %v405_v26 }
 0x20e   : > { %v504_v35 = vpop.f32.mrf.mxu1 }
 0x20f   : > { %v809_v36 = vmul.f32 -1.442695, %v504_v35 }
 0x210   : > { %v906_v37 = vpop.f32.mrf.mxu1 }
 0x211   : > { %1036 = vpow2.f32 %v809_v36 }
 0x212   : > { %v507_v38 = vpop.f32.mrf.mxu1 }
 0x213   : > { %v810_v39 = vmul.f32 -1.442695, %v507_v38 }
 0x214   : > { %v907_v40 = vpop.f32.mrf.mxu1 }
 0x215   : > { %1038 = vpow2.f32 %v810_v39 }
 0x21e   : > { %v1037_v41 = vpop.eup %1036 }
 0x21f   : > { %v517_v42 = vadd.f32 1.0, %v1037_v41 }
 0x221   : > { %1040 = vrcp.f32 %v517_v42 }
 0x222   : > { %v1039_v43 = vpop.eup %1038 }
 0x223   : > { %v518_v44 = vadd.f32 1.0, %v1039_v43 }
 0x225   : > { %1042 = vrcp.f32 %v518_v44 }
 0x22e   : > { %v1041_v45 = vpop.eup %1040 }
 0x22f   : > { %v831_v46 = vpack.c.bf16 %v1041_v45, %v1041_v45 }
 0x231   : > { %v531_v49 = vmul.bf16 %v831_v46, %v1449_v14 }
 0x232   : > { %v1043_v47 = vpop.eup %1042 }
 0x233   : > { %v832_v48 = vpack.c.bf16 %v1043_v47, %v1043_v47 }
 0x235   : > { %v532_v50 = vmul.bf16 %v832_v48, %v1452_v15 }
 0x237   : > { %v814_v51 = vcombine.low %v531_v49, %v532_v50 }
 0x239   : > { %925 = vmatmul.mubr.bf16.vlgmr.msra.gmra.mxu0 %v814_v51 }
 0x2f9   : > { %v644_v52 = vpop.f32.mrf.mxu0 }
 0x2fa   : > { %v645_v56 = vadd.f32 %v813_v53, %v644_v52 }
 0x2fb   : > { %v926_v54 = vpop.f32.mrf.mxu0 }
 0x2fd   : > { %v647_v55 = vpop.f32.mrf.mxu0 }
 0x2fe   : > { %v648_v57 = vadd.f32 %v813_v53, %v647_v55 }
 0x2ff   : > { %v927_v58 = vpop.f32.mrf.mxu0 }
 0x300   : > { %v839_v59 = vpack.c.bf16 %v648_v57, %v645_v56 }
 0x302   : > { %840 = vst [vmem:[%s286_s11] sm:$0xff] %v839_v59  }
 0x303   : > { %1163 = shalt.err (!%p1160_p10)
}
 0x304   : > { %s1164_s10 = scalar_lea.hbm %s1483_s14, 128  ;;  %s1168_s24 = scalar_lea.hbm %s1531_s5, 256 }
 0x305   : > { %p1165_p6 = scmp.ne.s32.totalorder %s1483_s14, %s1164_s10  ;;  %p1169_p3 = scmp.lt.s32.totalorder %s1483_s14, %s1531_s5 }
 0x306   : > { %p1170_p11 = scmp.lt.s32.totalorder %s1168_s24, %s1164_s10 }
 0x307   : > { %p1166_p4 = pnand %p1165_p6, %p1550_p1 }
 0x308   : > { %p1171_p5 = por %p1170_p11, %p1169_p3 }
 0x309   : > { %p1167_p8 = pneg %p1166_p4 }
 0x30b   : > { %p1172_p7 = pnand %p1171_p5, %p1167_p8 }
 0x30d   : > { %1175 = shalt.err (!%p1172_p7)
}
 0x30e   : > { %s1233_s17 = smov 64   ;;  %s1234_s27 = smov 4  }
 0x30f   : > { %942 = dma.vmem_to_hbm [thread:$0]  (%p1550_p1), %s1478_s15, 128, %s1483_s14, %s662_s9, %s1233_s17, %s1233_s17, %s1234_s27  }
 0x310 PF: > { %s690_s13 = sand.u32 1, %s1210_s18   ;;  %p1551_p12 = scmp.ne.s32.totalorder %s1538_s25, 0 }
 0x311   : > { %p1552_p9 = scmp.ge.s32.totalorder %s1222_s21, 2  ;;  %s691_s16 = scalar_lea.sflag [#allocation4], %s690_s13 }
 0x313   : > { %p959_p13 = pnand %p1552_p9, %p1551_p12 }
 0x315   : > { %p960_p0 = pneg %p959_p13 }
 0x317   : > { %1205 = dma.done.wait (%p960_p0), %s691_s16, 128  }
 0x318   : > { %1207 = vsyncadd (%p960_p0), %s691_s16, 4294967168  ;;  %p20_p2 = scmp.ge.s32.totalorder %s1354_s28, 4   ;;  %s1553_s18 = smov %s1214_s19 }
 0x319   : > { %s1554_s19 = smov %s1218_s20  ;;  %s1555_s20 = smov %s1364_s6 }
 0x31a   : > { %s1556_s21 = smov %s1354_s28  ;;  %22 = sbr.rel (!%p20_p2) target bundleno = 7 (0x7), region = 97 }
 0x31f   :  { %696 = vsyncpa [#allocation3], 1 }
 0x320   :  { %698 = vsyncpa [#allocation3 + $0x1], 1 }
 0x321   :  { %699 = vsyncpa [#allocation6], 1 }
 0x322   :  { %700 = vsyncpa [#allocation9], 1 }
 0x323   :  { %701 = vsyncpa [#allocation4], 1 }
 0x324   :  { %703 = vsyncpa [#allocation4 + $0x1], 1 }

// kernel: tpu_custom_call.1
= control target key start
LH: loop header
LB: loop body
LE: loop exit
PB: predicated region body
PF: predicated region fallthrough
CT: control target
= control target key end

     0   :  { %10 = vsyncpa [#allocation3], 0  ;;  %s1526_s0 = inlined_call_operand.hbm [shape: bf16[32,128], index: 0, kind: input, shape index: {}]   ;;  %s1527_s1 = inlined_call_operand.hbm [shape: bf16[128,128], index: 1, kind: input, shape index: {}]   ;;  %s1528_s2 = inlined_call_operand.hbm [shape: bf16[128,128], index: 2, kind: input, shape index: {}]   ;;  %s1529_s3 = inlined_call_operand.hbm [shape: bf16[128,128], index: 3, kind: input, shape index: {}]   ;;  %s1530_s4 = inlined_call_operand.vmem [shape: f32[1,128], index: 4, kind: input, shape index: {}]   ;;  %s1531_s5 = inlined_call_operand.hbm [shape: bf16[32,128], index: 5, kind: output, shape index: {}]  }
   0x1   :  { %12 = vsyncpa [#allocation3 + $0x1], 0 }
   0x2   :  { %13 = vsyncpa [#allocation6], 0 }
   0x3   :  { %14 = vsyncpa [#allocation9], 0 }
   0x4   :  { %15 = vsyncpa [#allocation4], 0 }
   0x5   :  { %17 = vsyncpa [#allocation4 + $0x1], 0  ;;  %s1265_s18 = smov 0   ;;  %s1267_s19 = smov 0  }
   0x6   :  { %s1269_s20 = smov 0   ;;  %s1271_s21 = smov 0  }
   0x7 LB: > { %s1286_s22 = sadd.s32 4294967295, %s1222_s21   ;;  %s777_s23 = sadd.s32 4294967294, %s1222_s21   ;;  %s1222_s21 = sphi %s1271_s21, %s1556_s21   ;;  %s1218_s20 = sphi %s1269_s20, %s1555_s20   ;;  %s1214_s19 = sphi %s1267_s19, %s1554_s19   ;;  %s1210_s18 = sphi %s1265_s18, %s1553_s18  }
   0x8   : > { %p43_p0 = scmp.ne.s32.totalorder %s1214_s19, %s1210_s18  ;;  %p1532_p1 = scmp.eq.s32.totalorder %s1286_s22, 0 }
   0x9   : > { %p151_p2 = scmp.eq.s32.totalorder %s1286_s22, 1  ;;  %p157_p3 = scmp.eq.s32.totalorder %s777_s23, 1 }
   0xa   : > { %p1295_p4 = por %p1532_p1, %p43_p0  ;;  %p778_p5 = scmp.ge.s32.totalorder %s1222_s21, 1 }
   0xb   : > { %p1300_p6 = por %p157_p3, %p43_p0  ;;  %p164_p7 = scmp.lt.s32.totalorder %s1222_s21, 3 }
   0xc   : > { %s1537_s24 = scalar_select %p1295_p4, 1, 0 }
   0xd   : > { %s1538_s25 = scalar_select %p1300_p6, 1, 0 }
   0xe   : > { %p1305_p8 = pnand %p778_p5, %p164_p7  ;;  %s1224_s27 = smov [#allocation5]  }
   0xf   : > { %s176_s28 = sshll.u32 %s1224_s27, 4  ;;  %s1225_s30 = smov [#allocation7]   ;;  %s177_s28 = int_to_ptr.vmem [resolvable:$true] %s176_s28 }
  0x10   : > { %s1539_s26 = scalar_select %p1305_p8, 1, 0 }
  0x11   : > { %p944_p9 = pneg %p1305_p8  ;;  %s189_s6 = sshll.u32 %s1225_s30, 4  ;;  %s190_s6 = int_to_ptr.vmem [resolvable:$true] %s189_s6 }
  0x12   : > { %s1226_s7 = smov [#allocation8]   ;;  %s1055_s9 = scalar_lea.vmem %s177_s28, 1024 }
  0x13   : > { %p1314_p11 = pnand %p944_p9, %p1532_p1  ;;  %s202_s8 = sshll.u32 %s1226_s7, 4  ;;  %s203_s8 = int_to_ptr.vmem [resolvable:$true] %s202_s8 }
  0x14   : > { %p1056_p13 = scmp.ne.s32.totalorder %s177_s28, %s1055_s9  ;;  %p1063_p5 = scmp.lt.s32.totalorder %s177_s28, %s177_s28 }
  0x15   : > { %p1046_p12 = pneg %p1314_p11  ;;  %p1064_p7 = scmp.lt.s32.totalorder %s1055_s9, %s1055_s9 }
  0x17   : > { %p1058_p0 = pnand %p1056_p13, %p1046_p12  ;;  %p1065_p9 = por %p1064_p7, %p1063_p5 }
  0x19   : > { %p1059_p3 = pneg %p1058_p0 }
  0x1b   : > { %p1066_p10 = pnand %p1065_p9, %p1059_p3 }
  0x1d   : > { %1069 = shalt.err (!%p1066_p10)
}
  0x1e   : > { %s1533_s10 = smov 64   ;;  %s1228_s11 = smov 4  }
  0x1f   : > { %947 = dma.hbm_to_vmem [thread:$0]  (!%p1314_p11), %s1527_s1, 1024, %s177_s28, [#allocation6], %s1533_s10, %s1533_s10, %s1228_s11  }
  0x20   : > { %s1081_s14 = scalar_lea.vmem %s190_s6, 1024  ;;  %p1089_p3 = scmp.lt.s32.totalorder %s190_s6, %s190_s6 }
  0x21   : > { %p1082_p13 = scmp.ne.s32.totalorder %s190_s6, %s1081_s14  ;;  %p1090_p10 = scmp.lt.s32.totalorder %s1081_s14, %s1081_s14 }
  0x23   : > { %p1084_p0 = pnand %p1082_p13, %p1046_p12  ;;  %p1091_p7 = por %p1090_p10, %p1089_p3 }
  0x25   : > { %p1085_p5 = pneg %p1084_p0 }
  0x27   : > { %p1092_p9 = pnand %p1091_p7, %p1085_p5 }
  0x29   : > { %1095 = shalt.err (!%p1092_p9)
}
  0x2a   : > { %950 = dma.hbm_to_vmem [thread:$0]  (!%p1314_p11), %s1528_s2, 1024, %s190_s6, [#allocation6], %s1533_s10, %s1533_s10, %s1228_s11  }
  0x2b   : > { %s1107_s17 = scalar_lea.vmem %s203_s8, 1024  ;;  %p1115_p3 = scmp.lt.s32.totalorder %s203_s8, %s203_s8 }
  0x2c   : > { %p1108_p1 = scmp.ne.s32.totalorder %s203_s8, %s1107_s17  ;;  %p1116_p5 = scmp.lt.s32.totalorder %s1107_s17, %s1107_s17 }
  0x2e   : > { %p1110_p13 = pnand %p1108_p1, %p1046_p12  ;;  %p1117_p10 = por %p1116_p5, %p1115_p3 }
  0x30   : > { %p1111_p0 = pneg %p1110_p13 }
  0x32   : > { %p1118_p7 = pnand %p1117_p10, %p1111_p0 }
  0x34   : > { %1121 = shalt.err (!%p1118_p7)
}
  0x35   : > { %953 = dma.hbm_to_vmem [thread:$0]  (!%p1314_p11), %s1529_s3, 1024, %s203_s8, [#allocation9], %s1533_s10, %s1533_s10, %s1228_s11  }
  0x36   : > { %s1354_s28 = sadd.s32 1, %s1222_s21   ;;  %s30_s30 = sadd.s32 1, %s1218_s20 }
  0x37   : > { %s27_s29 = ssub.s32 %s1222_s21, %s1354_s28  ;;  %p37_p12 = scmp.ne.s32.totalorder %s1218_s20, %s1214_s19 }
  0x38   : > { %p28_p1 = scmp.eq.s32.totalorder %s27_s29, 0  ;;  %p38_p9 = scmp.eq.s32.totalorder %s1222_s21, 0 }
  0x39   : > { %p965_p13 = scmp.lt.s32.totalorder %s1222_s21, 2  ;;  %p1368_p3 = por %p151_p2, %p37_p12 }
  0x3a   : > { %s1364_s6 = scalar_select %p28_p1, %s1218_s20, %s30_s30  }
  0x3b   : > { %p39_p0 = por %p38_p9, %p37_p12  ;;  %s219_s9 = sand.u32 1, %s1218_s20  }
  0x3c   : > { %s1541_s7 = scalar_select %p1368_p3, 1, 0 }
  0x3d   : > { %s830_s12 = sshll.u32 %s1222_s21, 7  ;;  %s783_s8 = sshll.u32 %s219_s9, 3 }
  0x3e   : > { %s1377_s15 = scalar_lea.hbm %s1526_s0, %s830_s12  ;;  %s223_s16 = scalar_lea.vmem [#allocation2], %s783_s8 }
  0x3f   : > { %s230_s17 = sshll.u32 %s223_s16, 4  ;;  %p1379_p11 = pnand %p965_p13, %p39_p0  ;;  %s1383_s17 = int_to_ptr.vmem [resolvable:$true] %s230_s17 }
  0x40   : > { %s1385_s27 = scalar_lea.sflag [#allocation3], %s219_s9  ;;  %s1122_s29 = scalar_lea.hbm %s1377_s15, 128 }
  0x41   : > { %p1123_p2 = scmp.ne.s32.totalorder %s1377_s15, %s1122_s29  ;;  %p1124_p5 = pneg %p1379_p11 }
  0x42   : > { %s1127_s8 = scalar_lea.hbm %s1526_s0, 256  ;;  %p1128_p1 = scmp.lt.s32.totalorder %s1377_s15, %s1526_s0 }
  0x43   : > { %p1125_p10 = pnand %p1124_p5, %p1123_p2  ;;  %p1129_p12 = scmp.lt.s32.totalorder %s1127_s8, %s1122_s29 }
  0x45   : > { %p1126_p7 = pneg %p1125_p10  ;;  %p1130_p9 = por %p1129_p12, %p1128_p1 }
  0x47   : > { %p1131_p13 = pnand %p1130_p9, %p1126_p7 }
  0x49   : > { %1134 = shalt.err (!%p1131_p13)
}
  0x4a   : > { %s1135_s9 = scalar_lea.vmem %s1383_s17, 128  ;;  %s1229_s16 = smov [#allocation2]  }
  0x4b   : > { %p1136_p0 = scmp.ne.s32.totalorder %s1383_s17, %s1135_s9  ;;  %s1140_s10 = sshll.u32 %s1229_s16, 4  ;;  %s1141_s10 = int_to_ptr.vmem [resolvable:$false] %s1140_s10 }
  0x4c   : > { %s1142_s30 = scalar_lea.vmem %s1141_s10, 256  ;;  %p1143_p10 = scmp.lt.s32.totalorder %s1383_s17, %s1141_s10 }
  0x4d   : > { %p1138_p6 = pnand %p1136_p0, %p1124_p5  ;;  %p1144_p3 = scmp.lt.s32.totalorder %s1142_s30, %s1135_s9 }
  0x4f   : > { %p1139_p2 = pneg %p1138_p6  ;;  %p1145_p4 = por %p1144_p3, %p1143_p10 }
  0x51   : > { %p1146_p8 = pnand %p1145_p4, %p1139_p2 }
  0x53   : > { %1149 = shalt.err (!%p1146_p8)
}
  0x54   : > { %s1543_s29 = smov 64   ;;  %p1544_p6 = scmp.ne.s32.totalorder %s1539_s26, 0 }
  0x55   : > { %957 = dma.hbm_to_vmem [thread:$0]  (!%p1379_p11), %s1377_s15, 128, %s1383_s17, %s1385_s27, %s1543_s29, %s1543_s29, %s1228_s11  }
  0x56   : > { %242 = sbr.rel (%p1544_p6) target bundleno = 784 (0x310), region = 40  ;;  %s1412_s12 = sand.u32 (!%p1544_p6), 1, %s1214_s19  }
  0x57   : > { %s787_s10 = sshll.u32 (!%p1544_p6), %s1412_s12, 3  ;;  %s245_s8 = scalar_lea.sflag (!%p1544_p6), [#allocation3], %s1412_s12 }
  0x58   : > { %s1418_s23 = scalar_lea.vmem (!%p1544_p6), [#allocation2], %s787_s10  ;;  %p1545_p4 = scmp.ne.s32.totalorder (!%p1544_p6), %s1537_s24, 0 }
  0x5b   : > { %1193 = dma.done.wait (%p1545_p4), %s245_s8, 128  }
  0x5c   : > { %1195 = vsyncadd (%p1545_p4), %s245_s8, 4294967168  ;;  %p1546_p8 = scmp.eq.s32.totalorder %s1286_s22, 0 }
  0x5e   : > { %1197 = dma.done.wait (%p1546_p8), [#allocation6], 2048   ;;  %p1547_p3 = pmov %p1546_p8 }
  0x60   : > { %1199 = vsyncadd (%p1547_p3), [#allocation6], 4294965248  ;;  %p1548_p11 = pmov %p1547_p3 }
  0x61   : > { %p1549_p5 = pmov %p1547_p3 }
  0x62   : > { %1201 = dma.done.wait (%p1548_p11), [#allocation9], 1024  }
  0x63   : > { %1203 = vsyncadd (%p1549_p5), [#allocation9], 4294966272  ;;  %v1230_v0 = vmov 0.0   ;;  %vm1231_vm0 = vmmov 0   ;;  %v1011_v1 = vld [vmem:[#allocation5 + $0x38] sm:$0xff]   ;;  %v1012_v2 = vld [vmem:[#allocation5 + $0x30] sm:$0xff]  }
  0x64   : > { %868 = vmatprep.subr.bf16.mxu0 %v1230_v0  ;;  %884 = vmatprep.mubr.msk.bf16.mxu0 %vm1231_vm0, %v1230_v0  ;;  %v1013_v3 = vld [vmem:[#allocation5 + $0x28] sm:$0xff]   ;;  %v1020_v4 = vld [vmem:[#allocation7 + $0x38] sm:$0xff]   ;;  %v1014_v5 = vld [vmem:[#allocation5 + $0x20] sm:$0xff]   ;;  %s286_s11 = scalar_lea.vmem [#allocation10], %s787_s10  ;;  %s835_s17 = sshll.u32 %s1286_s22, 7 }
  0x65   : > { %888 = vmatprep.subr.bf16.mxu1 %v1230_v0  ;;  %904 = vmatprep.mubr.msk.bf16.mxu1 %vm1231_vm0, %v1230_v0  ;;  %v1021_v6 = vld [vmem:[#allocation7 + $0x30] sm:$0xff]   ;;  %v1015_v7 = vld [vmem:[#allocation5 + $0x18] sm:$0xff]   ;;  %v1022_v8 = vld [vmem:[#allocation7 + $0x28] sm:$0xff]   ;;  %s675_s15 = sshll.u32 %s286_s11, 4  ;;  %s1483_s14 = scalar_lea.hbm %s1531_s5, %s835_s17  ;;  %s1478_s15 = int_to_ptr.vmem [resolvable:$true] %s675_s15 }
  0x66   : > { %869 = vmatpush3.bf16.msra.mxu0 %v1011_v1  ;;  %889 = vmatpush3.bf16.msra.mxu1 %v1020_v4  ;;  %v1016_v9 = vld [vmem:[#allocation5 + $0x10] sm:$0xff]   ;;  %v1023_v10 = vld [vmem:[#allocation7 + $0x20] sm:$0xff]   ;;  %v1017_v11 = vld [vmem:[#allocation5 + $0x8] sm:$0xff]   ;;  %s662_s9 = scalar_lea.sflag [#allocation4], %s1412_s12  ;;  %s1150_s16 = scalar_lea.vmem %s1478_s15, 128 }
  0x67   : > { %870 = vmatprep.subr.bf16.mxu0 %v1230_v0  ;;  %890 = vmatprep.subr.bf16.mxu1 %v1230_v0  ;;  %v1024_v12 = vld [vmem:[#allocation7 + $0x18] sm:$0xff]   ;;  %v1018_v13 = vld [vmem:[#allocation5] sm:$0xff]   ;;  %v1025_v16 = vld [vmem:[#allocation7 + $0x10] sm:$0xff]   ;;  %p1151_p7 = scmp.ne.s32.totalorder %s1478_s15, %s1150_s16  ;;  %p1550_p1 = scmp.ne.s32.totalorder %s1541_s7, 0 }
  0x68   : > { %v1449_v14 = vld [vmem:[%s1418_s23] sm:$0xf]  ;;  %v1452_v15 = vld [vmem:[%s1418_s23 + $0x4] sm:$0xf]  ;;  %v1026_v18 = vld [vmem:[#allocation7 + $0x8] sm:$0xff]   ;;  %s1232_s22 = smov [#allocation10]  }
  0x69   : > { %v792_v17 = vcombine.low %v1449_v14, %v1452_v15  ;;  %v1027_v19 = vld [vmem:[#allocation7] sm:$0xff]   ;;  %v1028_v27 = vld [vmem:[#allocation8 + $0x38] sm:$0xff]   ;;  %v1029_v28 = vld [vmem:[#allocation8 + $0x30] sm:$0xff]   ;;  %p1152_p12 = pnand %p1151_p7, %p1550_p1  ;;  %s1154_s30 = sshll.u32 %s1232_s22, 4  ;;  %s1155_s30 = int_to_ptr.vmem [resolvable:$false] %s1154_s30 }
  0x6a   : > { %871 = vmatpush3.bf16.msra.mxu0 %v1012_v2  ;;  %891 = vmatpush3.bf16.msra.mxu1 %v1021_v6  ;;  %v1030_v29 = vld [vmem:[#allocation8 + $0x28] sm:$0xff]   ;;  %v1031_v30 = vld [vmem:[#allocation8 + $0x20] sm:$0xff]   ;;  %v1032_v31 = vld [vmem:[#allocation8 + $0x18] sm:$0xff]   ;;  %s1156_s29 = scalar_lea.vmem %s1155_s30, 256  ;;  %p1157_p13 = scmp.lt.s32.totalorder %s1478_s15, %s1155_s30 }
  0x6b   : > { %872 = vmatprep.subr.bf16.mxu0 %v1230_v0  ;;  %892 = vmatprep.subr.bf16.mxu1 %v1230_v0  ;;  %v1033_v32 = vld [vmem:[#allocation8 + $0x10] sm:$0xff]   ;;  %v1034_v33 = vld [vmem:[#allocation8 + $0x8] sm:$0xff]   ;;  %v1035_v34 = vld [vmem:[#allocation8] sm:$0xff]   ;;  %p1153_p9 = pneg %p1152_p12  ;;  %p1158_p0 = scmp.lt.s32.totalorder %s1156_s29, %s1150_s16 }
  0x6c   : > { %v813_v53 = vld [vmem:[%s1530_s4] ss:$0 sm:$0xff] }
  0x6d   : > { %p1159_p2 = por %p1158_p0, %p1157_p13 }
  0x6e   : > { %873 = vmatpush3.bf16.msra.mxu0 %v1013_v3  ;;  %893 = vmatpush3.bf16.msra.mxu1 %v1022_v8 }
  0x6f   : > { %874 = vmatprep.subr.bf16.mxu0 %v1230_v0  ;;  %894 = vmatprep.subr.bf16.mxu1 %v1230_v0  ;;  %p1160_p10 = pnand %p1159_p2, %p1153_p9 }
  0x72   : > { %875 = vmatpush3.bf16.msra.mxu0 %v1014_v5  ;;  %895 = vmatpush3.bf16.msra.mxu1 %v1023_v10 }
  0x73   : > { %876 = vmatprep.subr.bf16.mxu0 %v1230_v0  ;;  %896 = vmatprep.subr.bf16.mxu1 %v1230_v0 }
  0x76   : > { %877 = vmatpush3.bf16.msra.mxu0 %v1015_v7  ;;  %897 = vmatpush3.bf16.msra.mxu1 %v1024_v12 }
  0x77   : > { %878 = vmatprep.subr.bf16.mxu0 %v1230_v0  ;;  %898 = vmatprep.subr.bf16.mxu1 %v1230_v0 }
  0x7a   : > { %879 = vmatpush3.bf16.msra.mxu0 %v1016_v9  ;;  %899 = vmatpush3.bf16.msra.mxu1 %v1025_v16 }
  0x7b   : > { %880 = vmatprep.subr.bf16.mxu0 %v1230_v0  ;;  %900 = vmatprep.subr.bf16.mxu1 %v1230_v0 }
  0x7e   : > { %881 = vmatpush3.bf16.msra.mxu0 %v1017_v11  ;;  %901 = vmatpush3.bf16.msra.mxu1 %v1026_v18 }
  0x7f   : > { %882 = vmatprep.subr.bf16.mxu0 %v1230_v0  ;;  %902 = vmatprep.subr.bf16.mxu1 %v1230_v0 }
  0x82   : > { %883 = vmatpush3.bf16.msra.mxu0 %v1018_v13  ;;  %903 = vmatpush3.bf16.msra.mxu1 %v1027_v19 }
  0x83   : > { %908 = vmatprep.subr.bf16.mxu0 %v1230_v0 }
  0x85   : > { %885 = vmatmul.mubr.bf16.vlgmr.msra.gmra.mxu0 %v792_v17 }
  0x86   : > { %924 = vmatprep.mubr.msk.bf16.mxu0 %vm1231_vm0, %v1230_v0  ;;  %909 = vmatpush3.bf16.msra.mxu0 %v1028_v27 }
  0x87   : > { %910 = vmatprep.subr.bf16.mxu0 %v1230_v0 }
  0x8a   : > { %911 = vmatpush3.bf16.msra.mxu0 %v1029_v28 }
  0x8b   : > { %912 = vmatprep.subr.bf16.mxu0 %v1230_v0 }
  0x8e   : > { %913 = vmatpush3.bf16.msra.mxu0 %v1030_v29 }
  0x8f   : > { %914 = vmatprep.subr.bf16.mxu0 %v1230_v0 }
  0x92   : > { %915 = vmatpush3.bf16.msra.mxu0 %v1031_v30 }
  0x93   : > { %916 = vmatprep.subr.bf16.mxu0 %v1230_v0 }
  0x96   : > { %917 = vmatpush3.bf16.msra.mxu0 %v1032_v31 }
  0x97   : > { %918 = vmatprep.subr.bf16.mxu0 %v1230_v0 }
  0x9a   : > { %919 = vmatpush3.bf16.msra.mxu0 %v1033_v32 }
  0x9b   : > { %920 = vmatprep.subr.bf16.mxu0 %v1230_v0 }
  0x9e   : > { %921 = vmatpush3.bf16.msra.mxu0 %v1034_v33 }
  0x9f   : > { %922 = vmatprep.subr.bf16.mxu0 %v1230_v0 }
  0xa2   : > { %923 = vmatpush3.bf16.msra.mxu0 %v1035_v34 }
 0x145   : > { %v396_v20 = vpop.f32.mrf.mxu0 }
 0x146   : > { %v403_v23 = vmax.f32 %v396_v20, 0.0 }
 0x147   : > { %v886_v21 = vpop.f32.mrf.mxu0 }
 0x149   : > { %v399_v22 = vpop.f32.mrf.mxu0 }
 0x14a   : > { %v404_v24 = vmax.f32 %v399_v22, 0.0 }
 0x14b   : > { %v887_v25 = vpop.f32.mrf.mxu0 }
 0x14c   : > { %v405_v26 = vpack.c.bf16 %v404_v24, %v403_v23 }
 0x14e   : > { %905 = vmatmul.mubr.bf16.vlgmr.msra.gmra.mxu1 %v405_v26 }
 0x20e   : > { %v504_v35 = vpop.f32.mrf.mxu1 }
 0x20f   : > { %v809_v36 = vmul.f32 -1.442695, %v504_v35 }
 0x210   : > { %v906_v37 = vpop.f32.mrf.mxu1 }
 0x211   : > { %1036 = vpow2.f32 %v809_v36 }
 0x212   : > { %v507_v38 = vpop.f32.mrf.mxu1 }
 0x213   : > { %v810_v39 = vmul.f32 -1.442695, %v507_v38 }
 0x214   : > { %v907_v40 = vpop.f32.mrf.mxu1 }
 0x215   : > { %1038 = vpow2.f32 %v810_v39 }
 0x21e   : > { %v1037_v41 = vpop.eup %1036 }
 0x21f   : > { %v517_v42 = vadd.f32 1.0, %v1037_v41 }
 0x221   : > { %1040 = vrcp.f32 %v517_v42 }
 0x222   : > { %v1039_v43 = vpop.eup %1038 }
 0x223   : > { %v518_v44 = vadd.f32 1.0, %v1039_v43 }
 0x225   : > { %1042 = vrcp.f32 %v518_v44 }
 0x22e   : > { %v1041_v45 = vpop.eup %1040 }
 0x22f   : > { %v831_v46 = vpack.c.bf16 %v1041_v45, %v1041_v45 }
 0x231   : > { %v531_v49 = vmul.bf16 %v831_v46, %v1449_v14 }
 0x232   : > { %v1043_v47 = vpop.eup %1042 }
 0x233   : > { %v832_v48 = vpack.c.bf16 %v1043_v47, %v1043_v47 }
 0x235   : > { %v532_v50 = vmul.bf16 %v832_v48, %v1452_v15 }
 0x237   : > { %v814_v51 = vcombine.low %v531_v49, %v532_v50 }
 0x239   : > { %925 = vmatmul.mubr.bf16.vlgmr.msra.gmra.mxu0 %v814_v51 }
 0x2f9   : > { %v644_v52 = vpop.f32.mrf.mxu0 }
 0x2fa   : > { %v645_v56 = vadd.f32 %v813_v53, %v644_v52 }
 0x2fb   : > { %v926_v54 = vpop.f32.mrf.mxu0 }
 0x2fd   : > { %v647_v55 = vpop.f32.mrf.mxu0 }
 0x2fe   : > { %v648_v57 = vadd.f32 %v813_v53, %v647_v55 }
 0x2ff   : > { %v927_v58 = vpop.f32.mrf.mxu0 }
 0x300   : > { %v839_v59 = vpack.c.bf16 %v648_v57, %v645_v56 }
 0x302   : > { %840 = vst [vmem:[%s286_s11] sm:$0xff] %v839_v59  }
 0x303   : > { %1163 = shalt.err (!%p1160_p10)
}
 0x304   : > { %s1164_s10 = scalar_lea.hbm %s1483_s14, 128  ;;  %s1168_s24 = scalar_lea.hbm %s1531_s5, 256 }
 0x305   : > { %p1165_p6 = scmp.ne.s32.totalorder %s1483_s14, %s1164_s10  ;;  %p1169_p3 = scmp.lt.s32.totalorder %s1483_s14, %s1531_s5 }
 0x306   : > { %p1170_p11 = scmp.lt.s32.totalorder %s1168_s24, %s1164_s10 }
 0x307   : > { %p1166_p4 = pnand %p1165_p6, %p1550_p1 }
 0x308   : > { %p1171_p5 = por %p1170_p11, %p1169_p3 }
 0x309   : > { %p1167_p8 = pneg %p1166_p4 }
 0x30b   : > { %p1172_p7 = pnand %p1171_p5, %p1167_p8 }
 0x30d   : > { %1175 = shalt.err (!%p1172_p7)
}
 0x30e   : > { %s1233_s17 = smov 64   ;;  %s1234_s27 = smov 4  }
 0x30f   : > { %942 = dma.vmem_to_hbm [thread:$0]  (%p1550_p1), %s1478_s15, 128, %s1483_s14, %s662_s9, %s1233_s17, %s1233_s17, %s1234_s27  }
 0x310 PF: > { %s690_s13 = sand.u32 1, %s1210_s18   ;;  %p1551_p12 = scmp.ne.s32.totalorder %s1538_s25, 0 }
 0x311   : > { %p1552_p9 = scmp.ge.s32.totalorder %s1222_s21, 2  ;;  %s691_s16 = scalar_lea.sflag [#allocation4], %s690_s13 }
 0x313   : > { %p959_p13 = pnand %p1552_p9, %p1551_p12 }
 0x315   : > { %p960_p0 = pneg %p959_p13 }
 0x317   : > { %1205 = dma.done.wait (%p960_p0), %s691_s16, 128  }
 0x318   : > { %1207 = vsyncadd (%p960_p0), %s691_s16, 4294967168  ;;  %p20_p2 = scmp.ge.s32.totalorder %s1354_s28, 4   ;;  %s1553_s18 = smov %s1214_s19 }
 0x319   : > { %s1554_s19 = smov %s1218_s20  ;;  %s1555_s20 = smov %s1364_s6 }
 0x31a   : > { %s1556_s21 = smov %s1354_s28  ;;  %22 = sbr.rel (!%p20_p2) target bundleno = 7 (0x7), region = 97 }
 0x31f   :  { %696 = vsyncpa [#allocation3], 1 }
 0x320   :  { %698 = vsyncpa [#allocation3 + $0x1], 1 }
 0x321   :  { %699 = vsyncpa [#allocation6], 1 }
 0x322   :  { %700 = vsyncpa [#allocation9], 1 }
 0x323   :  { %701 = vsyncpa [#allocation4], 1 }
 0x324   :  { %703 = vsyncpa [#allocation4 + $0x1], 1 }

</bundles_post_ra>
